<compile_context>
chip_gen: v6e
topology: v6e:2x2x1
jax: 0.10.0
libtpu: 0.0.40
codegen_flags: <defaults>
</compile_context>

<pallas_src>
import jax
import jax.numpy as jnp
from jax.experimental import pallas as pl
from jax.experimental.pallas import tpu as pltpu

L1, L2, L3, L4 = 8, 160, 100, 4
L3P = 128             # padded middle hidden width (lane-dense h2)
LPAD = 128            # padded head width for the softmax lanes
NEG_BIAS = -1e30      # padded-logit bias -> exp() underflows to exactly 0


def _round_up(n, m):
    return ((n + m - 1) // m) * m


def _inv_colnorm(x):
    """1 / max(||x[:, j]||_2, 1e-12) over the FULL batch (== F.normalize dim=0)."""
    sumsq = jnp.sum(x * x, axis=0, keepdims=True)              # (1, 8)
    return jax.lax.rsqrt(jnp.maximum(sumsq, 1e-24))            # == 1/max(sqrt(s),1e-12)


def _pick_tile(B, tb):
    """Batch tile: multiple of 8, <= padded batch, >=2 grid steps for big batches."""
    tb = max(8, _round_up(tb, 8))               # (8,128) rule: TB must be multiple of 8
    b8 = _round_up(B, 8)
    TB = min(tb, b8)
    # v7x megacore: if the whole batch fits one tile but is large, split in two
    # so dimension_semantics=("parallel",) actually uses both TensorCores.
    if TB == b8 and b8 >= 1024:
        TB = _round_up(pl.cdiv(b8, 2), 8)
    Bp = _round_up(B, TB)
    return TB, Bp


def dqnet_kernel(x_ref, w1_ref, b1_ref, w2_ref, b2_ref, w3_ref, b3_ref, o_ref):
    # Layer 1 (column-norm already folded into w1). bf16 operands, f32 accumulate.
    xb = x_ref[...].astype(jnp.bfloat16)
    h1 = jnp.dot(xb, w1_ref[...], preferred_element_type=jnp.float32) + b1_ref[...]
    h1 = jnp.maximum(h1, 0.0)

    # Layer 2 (output padded 100 -> 128 zero cols: lane-dense h2, exact numerics).
    h2 = jnp.dot(h1.astype(jnp.bfloat16), w2_ref[...],
                 preferred_element_type=jnp.float32) + b2_ref[...]
    h2 = jnp.maximum(h2, 0.0)

    # Layer 3 (head padded to 128 lanes; real logits in lanes 0..3, -1e30 elsewhere).
    logits = jnp.dot(h2.astype(jnp.bfloat16), w3_ref[...],
                     preferred_element_type=jnp.float32) + b3_ref[...]

    # Softmax over lanes in f32; padded lanes contribute exp(-1e30 - m) == 0.
    m = jnp.max(logits, axis=-1, keepdims=True)
    e = jnp.exp(logits - m)
    d = jnp.sum(e, axis=-1, keepdims=True)
    r = pl.reciprocal(d, approx=True)       # EUP seed
    r = r * (2.0 - d * r)                   # one Newton step -> near-exact, cheap
    p = e * r

    # Narrow writeback: only the 4 real action lanes go to HBM.
    o_ref[...] = p[:, :L4]


def dqnet_forward(x, params, tb=2048):
    """x: (B, 8) float32. params: w1,b1,w2,b2,w3,b3 with w already (in, out)."""
    B = x.shape[0]
    w1, b1 = params["w1"], params["b1"]
    w2, b2 = params["w2"], params["b2"]
    w3, b3 = params["w3"], params["b3"]

    # Whole-batch column norm (must NOT be per-tile), folded into layer-1 weights.
    inv = _inv_colnorm(x)                                       # (1, 8)
    w1p = (inv.T * w1).astype(jnp.bfloat16)                     # (8, 160) bf16

    # Pad hidden 100 -> 128 (zeros: exact) and head 4 -> 128 lanes.
    w2p = jnp.pad(w2, ((0, 0), (0, L3P - L3))).astype(jnp.bfloat16)     # (160, 128)
    b2p = jnp.pad(b2, ((0, 0), (0, L3P - L3)))                           # (1, 128) f32
    w3p = jnp.pad(w3, ((0, L3P - L3), (0, LPAD - L4))).astype(jnp.bfloat16)  # (128, 128)
    b3p = jnp.pad(b3, ((0, 0), (0, LPAD - L4)), constant_values=NEG_BIAS)    # (1, 128) f32

    TB, Bp = _pick_tile(B, tb)
    if Bp != B:
        x = jnp.pad(x, ((0, Bp - B), (0, 0)))                   # pad rows sliced off below
    grid = (Bp // TB,)

    def resident(arr):
        # Constant index_map: block never changes across the batch grid ->
        # fetched once, stays VMEM-resident.
        return pl.BlockSpec(arr.shape, lambda i: (0,) * arr.ndim)

    out = pl.pallas_call(
        dqnet_kernel,
        out_shape=jax.ShapeDtypeStruct((Bp, L4), jnp.float32),
        grid=grid,
        in_specs=[
            pl.BlockSpec((TB, L1), lambda i: (i, 0)),           # x: tiled over batch
            resident(w1p), resident(b1),
            resident(w2p), resident(b2p),
            resident(w3p), resident(b3p),
        ],
        out_specs=pl.BlockSpec((TB, L4), lambda i: (i, 0)),     # narrow output block
        compiler_params=pltpu.CompilerParams(
            dimension_semantics=("parallel",)),                 # megacore split on v7x
    )(x, w1p, b1, w2p, b2p, w3p, b3p)

    return out[:B]


def init_params(key):
    """Deterministic init mimicking nn.Linear defaults (U[-1/sqrt(fan_in), +])."""
    ks = jax.random.split(key, 6)

    def linear(kw, kb, fan_in, fan_out):
        bound = 1.0 / jnp.sqrt(jnp.float32(fan_in))
        w = jax.random.uniform(kw, (fan_in, fan_out), jnp.float32, -bound, bound)
        b = jax.random.uniform(kb, (1, fan_out), jnp.float32, -bound, bound)
        return w, b

    w1, b1 = linear(ks[0], ks[1], L1, L2)
    w2, b2 = linear(ks[2], ks[3], L2, L3)
    w3, b3 = linear(ks[4], ks[5], L3, L4)
    return dict(w1=w1, b1=b1, w2=w2, b2=b2, w3=w3, b3=b3)


def dqnet_reference_f32(x, p):
    """Pure-JAX f32 reference matching the PyTorch forward."""
    xn = x * _inv_colnorm(x)
    h = jax.nn.relu(xn @ p["w1"] + p["b1"])
    h = jax.nn.relu(h @ p["w2"] + p["b2"])
    logits = h @ p["w3"] + p["b3"]
    return jax.nn.softmax(logits, axis=-1)


def dqnet_reference_bf16(x, p):
    """Reference with the kernel's exact numerics (bf16 operands, f32 accumulate)."""
    inv = _inv_colnorm(x)
    w1p = (inv.T * p["w1"]).astype(jnp.bfloat16)
    h = jnp.maximum(jnp.dot(x.astype(jnp.bfloat16), w1p,
                            preferred_element_type=jnp.float32) + p["b1"], 0.0)
    h = jnp.maximum(jnp.dot(h.astype(jnp.bfloat16), p["w2"].astype(jnp.bfloat16),
                            preferred_element_type=jnp.float32) + p["b2"], 0.0)
    logits = jnp.dot(h.astype(jnp.bfloat16), p["w3"].astype(jnp.bfloat16),
                     preferred_element_type=jnp.float32) + p["b3"]
    return jax.nn.softmax(logits, axis=-1)


if __name__ == "__main__":
    key = jax.random.PRNGKey(0)
    kx, kx2, kp = jax.random.split(key, 3)
    params = init_params(kp)

    # Small batch of LunarLander states (state dim = 8).
    B = 2
    x = jax.random.normal(kx, (B, L1), jnp.float32)
    out = jax.block_until_ready(dqnet_forward(x, params))
    ref_b = dqnet_reference_bf16(x, params)
    ref_f = dqnet_reference_f32(x, params)
    assert out.shape == (B, L4)
    assert jnp.allclose(out, ref_b, atol=1e-4, rtol=1e-4), "mismatch vs bf16 reference (B=2)"
    assert jnp.allclose(out, ref_f, atol=1e-2, rtol=1e-2), "mismatch vs f32 reference (B=2)"
    assert jnp.allclose(jnp.sum(out, axis=-1), jnp.ones((B,)), atol=1e-4)

    # Exercise the multi-tile batch grid: ragged B, tb NOT a multiple of 8
    # (wrapper rounds it up), pad rows sliced off.
    B2 = 50
    x2 = jax.random.normal(kx2, (B2, L1), jnp.float32)
    out2 = jax.block_until_ready(dqnet_forward(x2, params, tb=20))
    ref2_b = dqnet_reference_bf16(x2, params)
    ref2_f = dqnet_reference_f32(x2, params)
    assert out2.shape == (B2, L4)
    assert jnp.allclose(out2, ref2_b, atol=1e-4, rtol=1e-4), "mismatch vs bf16 reference (B=50)"
    assert jnp.allclose(out2, ref2_f, atol=1e-2, rtol=1e-2), "mismatch vs f32 reference (B=50)"
    assert jnp.allclose(jnp.sum(out2, axis=-1), jnp.ones((B2,)), atol=1e-4)

    print("KERNEL_OK")
</pallas_src>

<mosaic_0001>
module attributes {stable_mosaic.version = 11 : i64} {
  func.func @dqnet_kernel(%arg0: i32, %arg1: memref<8x8xf32, #tpu.memory_space<vmem>>, %arg2: memref<8x160xbf16, #tpu.memory_space<vmem>>, %arg3: memref<1x160xf32, #tpu.memory_space<vmem>>, %arg4: memref<160x128xbf16, #tpu.memory_space<vmem>>, %arg5: memref<1x128xf32, #tpu.memory_space<vmem>>, %arg6: memref<128x128xbf16, #tpu.memory_space<vmem>>, %arg7: memref<1x128xf32, #tpu.memory_space<vmem>>, %arg8: memref<8x4xf32, #tpu.memory_space<vmem>>) attributes {dimension_semantics = [#tpu.dimension_semantics<parallel>], iteration_bounds = array<i64: 1>, scalar_prefetch = 0 : i64, scratch_operands = 0 : i64, tpu.core_type = #tpu.core_type<tc>, window_params = [{transform_indices = @transform_0, window_bounds = array<i64: 8, 8>}, {pipeline_mode = #tpu.pipeline_mode<synchronous>, transform_indices = @transform_1, window_bounds = array<i64: 8, 160>}, {pipeline_mode = #tpu.pipeline_mode<synchronous>, transform_indices = @transform_2, window_bounds = array<i64: 1, 160>}, {pipeline_mode = #tpu.pipeline_mode<synchronous>, transform_indices = @transform_3, window_bounds = array<i64: 160, 128>}, {pipeline_mode = #tpu.pipeline_mode<synchronous>, transform_indices = @transform_4, window_bounds = array<i64: 1, 128>}, {pipeline_mode = #tpu.pipeline_mode<synchronous>, transform_indices = @transform_5, window_bounds = array<i64: 128, 128>}, {pipeline_mode = #tpu.pipeline_mode<synchronous>, transform_indices = @transform_6, window_bounds = array<i64: 1, 128>}, {transform_indices = @transform_7, window_bounds = array<i64: 8, 4>}]} {
    %c0 = arith.constant 0 : index
    %c0_0 = arith.constant 0 : index
    %0 = vector.load %arg1[%c0, %c0_0] : memref<8x8xf32, #tpu.memory_space<vmem>>, vector<8x8xf32>
    %1 = arith.truncf %0 : vector<8x8xf32> to vector<8x8xbf16>
    %c0_1 = arith.constant 0 : index
    %c0_2 = arith.constant 0 : index
    %2 = vector.load %arg2[%c0_1, %c0_2] : memref<8x160xbf16, #tpu.memory_space<vmem>>, vector<8x160xbf16>
    %cst = arith.constant dense<0.000000e+00> : vector<8x160xf32>
    %3 = tpu.matmul %1, %2, %cst {dimension_numbers = #tpu.dot_dimension_numbers<[1], [0], [0], [1], [0, 0, 1, 1], [], []>} : vector<8x8xbf16>, vector<8x160xbf16>, vector<8x160xf32> -> vector<8x160xf32>
    %c0_3 = arith.constant 0 : index
    %c0_4 = arith.constant 0 : index
    %4 = vector.load %arg3[%c0_3, %c0_4] : memref<1x160xf32, #tpu.memory_space<vmem>>, vector<1x160xf32>
    %5 = vector.broadcast %4 : vector<1x160xf32> to vector<8x160xf32>
    %6 = arith.addf %3, %5 : vector<8x160xf32>
    %cst_5 = arith.constant 0.000000e+00 : f32
    %7 = vector.broadcast %cst_5 : f32 to vector<8x160xf32>
    %8 = arith.maximumf %6, %7 : vector<8x160xf32>
    %9 = arith.truncf %8 : vector<8x160xf32> to vector<8x160xbf16>
    %c0_6 = arith.constant 0 : index
    %c0_7 = arith.constant 0 : index
    %10 = vector.load %arg4[%c0_6, %c0_7] : memref<160x128xbf16, #tpu.memory_space<vmem>>, vector<160x128xbf16>
    %cst_8 = arith.constant dense<0.000000e+00> : vector<8x128xf32>
    %11 = tpu.matmul %9, %10, %cst_8 {dimension_numbers = #tpu.dot_dimension_numbers<[1], [0], [0], [1], [0, 0, 1, 1], [], []>} : vector<8x160xbf16>, vector<160x128xbf16>, vector<8x128xf32> -> vector<8x128xf32>
    %c0_9 = arith.constant 0 : index
    %c0_10 = arith.constant 0 : index
    %12 = vector.load %arg5[%c0_9, %c0_10] : memref<1x128xf32, #tpu.memory_space<vmem>>, vector<1x128xf32>
    %13 = vector.broadcast %12 : vector<1x128xf32> to vector<8x128xf32>
    %14 = arith.addf %11, %13 : vector<8x128xf32>
    %cst_11 = arith.constant 0.000000e+00 : f32
    %15 = vector.broadcast %cst_11 : f32 to vector<8x128xf32>
    %16 = arith.maximumf %14, %15 : vector<8x128xf32>
    %17 = arith.truncf %16 : vector<8x128xf32> to vector<8x128xbf16>
    %c0_12 = arith.constant 0 : index
    %c0_13 = arith.constant 0 : index
    %18 = vector.load %arg6[%c0_12, %c0_13] : memref<128x128xbf16, #tpu.memory_space<vmem>>, vector<128x128xbf16>
    %cst_14 = arith.constant dense<0.000000e+00> : vector<8x128xf32>
    %19 = tpu.matmul %17, %18, %cst_14 {dimension_numbers = #tpu.dot_dimension_numbers<[1], [0], [0], [1], [0, 0, 1, 1], [], []>} : vector<8x128xbf16>, vector<128x128xbf16>, vector<8x128xf32> -> vector<8x128xf32>
    %c0_15 = arith.constant 0 : index
    %c0_16 = arith.constant 0 : index
    %20 = vector.load %arg7[%c0_15, %c0_16] : memref<1x128xf32, #tpu.memory_space<vmem>>, vector<1x128xf32>
    %21 = vector.broadcast %20 : vector<1x128xf32> to vector<8x128xf32>
    %22 = arith.addf %19, %21 : vector<8x128xf32>
    %cst_17 = arith.constant dense<0xFF800000> : vector<8xf32>
    %23 = vector.multi_reduction <maximumf>, %22, %cst_17 [1] : vector<8x128xf32> to vector<8xf32>
    %24 = vector.shape_cast %23 : vector<8xf32> to vector<8x1xf32>
    %25 = vector.broadcast %24 : vector<8x1xf32> to vector<8x128xf32>
    %26 = arith.subf %22, %25 : vector<8x128xf32>
    %27 = math.exp %26 : vector<8x128xf32>
    %cst_18 = arith.constant dense<0.000000e+00> : vector<8xf32>
    %28 = vector.multi_reduction <add>, %27, %cst_18 [1] : vector<8x128xf32> to vector<8xf32>
    %29 = vector.shape_cast %28 : vector<8xf32> to vector<8x1xf32>
    %30 = tpu.reciprocal %29 {approx = true} : vector<8x1xf32> -> vector<8x1xf32>
    %31 = arith.mulf %29, %30 : vector<8x1xf32>
    %cst_19 = arith.constant 2.000000e+00 : f32
    %32 = vector.broadcast %cst_19 : f32 to vector<8x1xf32>
    %33 = arith.subf %32, %31 : vector<8x1xf32>
    %34 = arith.mulf %30, %33 : vector<8x1xf32>
    %35 = vector.broadcast %34 : vector<8x1xf32> to vector<8x128xf32>
    %36 = arith.mulf %27, %35 : vector<8x128xf32>
    %37 = vector.extract_strided_slice %36 {offsets = [0, 0], sizes = [8, 4], strides = [1, 1]} : vector<8x128xf32> to vector<8x4xf32>
    %c0_20 = arith.constant 0 : index
    %c0_21 = arith.constant 0 : index
    %38 = vector.load %arg8[%c0_20, %c0_21] : memref<8x4xf32, #tpu.memory_space<vmem>>, vector<8x4xf32>
    tpu.vector_store %arg8[%c0_20, %c0_21], %37 {strides = array<i32>} : memref<8x4xf32, #tpu.memory_space<vmem>>, vector<8x4xf32>,
    return
  }
  func.func @transform_0(%arg0: i32) -> (i32, i32) {
    %c0_i32 = arith.constant 0 : i32
    %c0_i32_0 = arith.constant 0 : i32
    return %arg0, %c0_i32 : i32, i32
  }
  func.func @transform_1(%arg0: i32) -> (i32, i32) {
    %c0_i32 = arith.constant 0 : i32
    %c0_i32_0 = arith.constant 0 : i32
    %c0_i32_1 = arith.constant 0 : i32
    return %c0_i32, %c0_i32_0 : i32, i32
  }
  func.func @transform_2(%arg0: i32) -> (i32, i32) {
    %c0_i32 = arith.constant 0 : i32
    %c0_i32_0 = arith.constant 0 : i32
    %c0_i32_1 = arith.constant 0 : i32
    return %c0_i32, %c0_i32_0 : i32, i32
  }
  func.func @transform_3(%arg0: i32) -> (i32, i32) {
    %c0_i32 = arith.constant 0 : i32
    %c0_i32_0 = arith.constant 0 : i32
    %c0_i32_1 = arith.constant 0 : i32
    return %c0_i32, %c0_i32_0 : i32, i32
  }
  func.func @transform_4(%arg0: i32) -> (i32, i32) {
    %c0_i32 = arith.constant 0 : i32
    %c0_i32_0 = arith.constant 0 : i32
    %c0_i32_1 = arith.constant 0 : i32
    return %c0_i32, %c0_i32_0 : i32, i32
  }
  func.func @transform_5(%arg0: i32) -> (i32, i32) {
    %c0_i32 = arith.constant 0 : i32
    %c0_i32_0 = arith.constant 0 : i32
    %c0_i32_1 = arith.constant 0 : i32
    return %c0_i32, %c0_i32_0 : i32, i32
  }
  func.func @transform_6(%arg0: i32) -> (i32, i32) {
    %c0_i32 = arith.constant 0 : i32
    %c0_i32_0 = arith.constant 0 : i32
    %c0_i32_1 = arith.constant 0 : i32
    return %c0_i32, %c0_i32_0 : i32, i32
  }
  func.func @transform_7(%arg0: i32) -> (i32, i32) {
    %c0_i32 = arith.constant 0 : i32
    %c0_i32_0 = arith.constant 0 : i32
    return %arg0, %c0_i32 : i32, i32
  }
}

</mosaic_0001>

<bundles_post_ra>
// kernel: tpu_custom_call.1
= control target key start
LH: loop header
LB: loop body
LE: loop exit
PB: predicated region body
PF: predicated region fallthrough
CT: control target
= control target key end

     0   :  { %12 = vsyncpa [#allocation3], 0  ;;  %s665_s0 = inlined_call_operand.hbm [shape: f32[8,8], index: 0, kind: input, shape index: {}]   ;;  %s666_s1 = inlined_call_operand.hbm [shape: bf16[8,160], index: 1, kind: input, shape index: {}]   ;;  %s667_s2 = inlined_call_operand.vmem [shape: f32[1,160], index: 2, kind: input, shape index: {}]   ;;  %s668_s3 = inlined_call_operand.hbm [shape: bf16[160,128], index: 3, kind: input, shape index: {}]   ;;  %s669_s4 = inlined_call_operand.vmem [shape: f32[1,128], index: 4, kind: input, shape index: {}]   ;;  %s670_s5 = inlined_call_operand.hbm [shape: bf16[128,128], index: 5, kind: input, shape index: {}]   ;;  %s671_s6 = inlined_call_operand.vmem [shape: f32[1,128], index: 6, kind: input, shape index: {}]   ;;  %s672_s7 = inlined_call_operand.vmem [shape: f32[8,4], index: 7, kind: output, shape index: {}]  }
   0x1   :  { %13 = vsyncpa [#allocation5], 0 }
   0x2   :  { %14 = vsyncpa [#allocation8], 0  ;;  %s592_s24 = smov [#allocation4]   ;;  %s593_s26 = smov [#allocation2]  }
   0x3   :  { %s31_s25 = sshll.u32 %s592_s24, 4  ;;  %s21_s27 = sshll.u32 %s593_s26, 4  ;;  %s32_s25 = int_to_ptr.vmem [resolvable:$true] %s31_s25  ;;  %s22_s27 = int_to_ptr.vmem [resolvable:$true] %s21_s27 }
   0x4   :  { %s514_s28 = scalar_lea.vmem %s32_s25, 128  ;;  %p519_p1 = scmp.lt.s32.totalorder %s32_s25, %s32_s25 }
   0x5   :  { %p515_p0 = scmp.ne.s32.totalorder %s32_s25, %s514_s28  ;;  %p520_p2 = scmp.lt.s32.totalorder %s514_s28, %s514_s28 }
   0x7   :  { %p521_p3 = por %p520_p2, %p519_p1 }
   0x9   :  { %p522_p4 = pnand %p521_p3, %p515_p0 }
   0xb   :  { %525 = shalt.err (!%p522_p4)
}
   0xc   :  { %34 = dma.hbm_to_vmem [thread:$0]  %s666_s1, 128, %s32_s25, [#allocation5]  }
   0xd   :  { %s534_s8 = scalar_lea.vmem %s22_s27, 128  ;;  %p539_p6 = scmp.lt.s32.totalorder %s22_s27, %s22_s27 }
   0xe   :  { %p535_p5 = scmp.ne.s32.totalorder %s22_s27, %s534_s8  ;;  %p540_p7 = scmp.lt.s32.totalorder %s534_s8, %s534_s8 }
  0x10   :  { %p541_p8 = por %p540_p7, %p539_p6 }
  0x12   :  { %p542_p9 = pnand %p541_p8, %p535_p5 }
  0x14   :  { %545 = shalt.err (!%p542_p9)
}
  0x15   :  { %24 = dma.hbm_to_vmem [thread:$0]  %s665_s0, 128, %s22_s27, [#allocation3]  }
  0x16   :  { %s594_s11 = smov [#allocation6]  }
  0x17   :  { %s42_s12 = sshll.u32 %s594_s11, 4  ;;  %s43_s12 = int_to_ptr.vmem [resolvable:$true] %s42_s12 }
  0x18   :  { %s554_s13 = scalar_lea.vmem %s43_s12, 1280  ;;  %p559_p11 = scmp.lt.s32.totalorder %s43_s12, %s43_s12 }
  0x19   :  { %p555_p10 = scmp.ne.s32.totalorder %s43_s12, %s554_s13  ;;  %p560_p12 = scmp.lt.s32.totalorder %s554_s13, %s554_s13 }
  0x1b   :  { %p561_p13 = por %p560_p12, %p559_p11 }
  0x1d   :  { %p562_p0 = pnand %p561_p13, %p555_p10 }
  0x1f   :  { %565 = shalt.err (!%p562_p0)
}
  0x20   :  { %s595_s1 = smov 64   ;;  %s596_s14 = smov 4  }
  0x21   :  { %48 = dma.hbm_to_vmem [thread:$0]  %s668_s3, 1280, %s43_s12, [#allocation5], %s595_s1, %s595_s1, %s596_s14  }
  0x22   :  { %s597_s17 = smov [#allocation7]  }
  0x23   :  { %s56_s18 = sshll.u32 %s597_s17, 4  ;;  %s57_s18 = int_to_ptr.vmem [resolvable:$true] %s56_s18 }
  0x24   :  { %s574_s0 = scalar_lea.vmem %s57_s18, 1024  ;;  %p579_p2 = scmp.lt.s32.totalorder %s57_s18, %s57_s18 }
  0x25   :  { %p575_p1 = scmp.ne.s32.totalorder %s57_s18, %s574_s0  ;;  %p580_p3 = scmp.lt.s32.totalorder %s574_s0, %s574_s0 }
  0x27   :  { %p581_p4 = por %p580_p3, %p579_p2 }
  0x29   :  { %p582_p5 = pnand %p581_p4, %p575_p1 }
  0x2b   :  { %585 = shalt.err (!%p582_p5)
}
  0x2c   :  { %62 = dma.hbm_to_vmem [thread:$0]  %s670_s5, 1024, %s57_s18, [#allocation8], %s595_s1, %s595_s1, %s596_s14  }
  0x2d   :  { %586 = dma.done.wait [#allocation3], 128  }
  0x2e   :  { %587 = vsyncadd [#allocation3], 4294967168 }
  0x2f   :  { %588 = dma.done.wait [#allocation5], 1408  }
  0x30   :  { %589 = vsyncadd [#allocation5], 4294965888 }
  0x31   :  { %590 = dma.done.wait [#allocation8], 1024  }
  0x32   :  { %591 = vsyncadd [#allocation8], 4294966272  ;;  %v598_v0 = vmov 0   ;;  %v80_v1 = vld [vmem:[#allocation4] sm:$0xff]  ;;  %vm102_vm0 = vcmask 1043456   ;;  %v78_v2 = vld [vmem:[#allocation2] sm:$0xff]  ;;  %v83_v24 = vlaneseq }
  0x33   :  { %141 = vmatprep.mubr.bf16.mxu0 %v598_v0  ;;  %245 = vmatprep.subr.bf16.mxu1 %v598_v0  ;;  %v420_v3 = vcombine.high %v80_v1, %v80_v1  ;;  %v419_v4 = vcombine.low %v80_v1, %v80_v1  ;;  %v484_v5 = vld [vmem:[#allocation6 + $0x38] sm:$0xff]   ;;  %v79_v7 = vpack.c.bf16 %v78_v2, %v78_v2  ;;  %v485_v8 = vld [vmem:[#allocation6 + $0x30] sm:$0xff]   ;;  %vm98_vm1 = vcmask 64512   ;;  %v486_v9 = vld [vmem:[#allocation6 + $0x28] sm:$0xff]  }
  0x34   :  { %246 = vmatpush1.bf16.msra.mxu1 %v484_v5  ;;  %v487_v10 = vld [vmem:[#allocation6 + $0x20] sm:$0xff]   ;;  %v488_v11 = vld [vmem:[#allocation6 + $0x18] sm:$0xff]   ;;  %v489_v12 = vld [vmem:[#allocation6 + $0x10] sm:$0xff]   ;;  %v599_v18 = vmov 0.0   ;;  %v84_v25 = vshrl.u32 %v83_v24, 7  ;;  %vm241_vm2 = vcmask 261120  }
  0x35   :  { %421 = vmatprep.subr.msk.bf16.mxu0 %vm102_vm0, %v420_v3  ;;  %v104_v6 = vsel %vm102_vm0, %v419_v4, 0  ;;  %247 = vmatprep.subr.bf16.mxu1 %v598_v0  ;;  %v490_v13 = vld [vmem:[#allocation6 + $0x8] sm:$0xff]   ;;  %v491_v14 = vld [vmem:[#allocation6] sm:$0xff]   ;;  %v496_v20 = vld [vmem:[#allocation7 + $0x28] sm:$0xff]   ;;  %vm600_vm3 = vmmov 0   ;;  %vm410_vm4 = vcmask 31744  }
  0x36   :  { %124 = vmatpush1.bf16.msra.mxu0 %v104_v6  ;;  %v492_v15 = vld [vmem:[#allocation6 + $0x48] sm:$0xff]   ;;  %v493_v16 = vld [vmem:[#allocation6 + $0x40] sm:$0xff]   ;;  %v497_v21 = vld [vmem:[#allocation7 + $0x20] sm:$0xff]   ;;  %v85_v26 = vsub.s32 0, %v84_v25  ;;  %v89_v28 = vsub.s32 1, %v84_v25 }
  0x37   :  { %v494_v17 = vld [vmem:[#allocation7 + $0x38] sm:$0xff]   ;;  %453 = vmatprep.subr.bf16.mxu0 %v599_v18  ;;  %v495_v19 = vld [vmem:[#allocation7 + $0x30] sm:$0xff]   ;;  %v81_v27 = vld [vmem:[%s667_s2] sm:$0x3] }
  0x38   :  { %248 = vmatpush1.bf16.msra.mxu1 %v485_v8  ;;  %v498_v22 = vld [vmem:[#allocation7 + $0x18] sm:$0xff]   ;;  %v499_v23 = vld [vmem:[#allocation7 + $0x10] sm:$0xff]   ;;  %v86_v29 = vrot.slane %v81_v27, %v85_v26  ;;  %v90_v30 = vrot.slane %v81_v27, %v89_v28  ;;  %v500_v41 = vld [vmem:[#allocation7 + $0x8] sm:$0xff]  }
  0x39   :  { %422 = vmatmul.mubr.msk.bf16.vlgmr.msra.gmra.mxu0 %vm98_vm1, %v79_v7  ;;  %249 = vmatprep.subr.bf16.mxu1 %v598_v0  ;;  %v501_v42 = vld [vmem:[#allocation7] sm:$0xff]  }
  0x3a   :  { %454 = vmatpush3.bf16.msra.mxu0 %v494_v17  ;;  %469 = vmatprep.mubr.msk.bf16.mxu0 %vm600_vm3, %v599_v18  ;;  %v423_v43 = vld [vmem:[%s669_s4] ss:$0 sm:$0xff] }
  0x3b   :  { %455 = vmatprep.subr.bf16.mxu0 %v599_v18  ;;  %v435_v51 = vld [vmem:[%s671_s6] ss:$0 sm:$0xff] }
  0x3c   :  { %250 = vmatpush1.bf16.msra.mxu1 %v486_v9 }
  0x3d   :  { %251 = vmatprep.subr.bf16.mxu1 %v598_v0 }
  0x3e   :  { %456 = vmatpush3.bf16.msra.mxu0 %v495_v19 }
  0x3f   :  { %457 = vmatprep.subr.bf16.mxu0 %v599_v18 }
  0x40   :  { %252 = vmatpush1.bf16.msra.mxu1 %v487_v10 }
  0x41   :  { %253 = vmatprep.subr.bf16.mxu1 %v598_v0 }
  0x42   :  { %458 = vmatpush3.bf16.msra.mxu0 %v496_v20 }
  0x43   :  { %459 = vmatprep.subr.bf16.mxu0 %v599_v18 }
  0x44   :  { %254 = vmatpush1.bf16.msra.mxu1 %v488_v11 }
  0x45   :  { %255 = vmatprep.subr.bf16.mxu1 %v598_v0 }
  0x46   :  { %460 = vmatpush3.bf16.msra.mxu0 %v497_v21 }
  0x47   :  { %461 = vmatprep.subr.bf16.mxu0 %v599_v18 }
  0x48   :  { %256 = vmatpush1.bf16.msra.mxu1 %v489_v12 }
  0x49   :  { %257 = vmatprep.subr.bf16.mxu1 %v598_v0 }
  0x4a   :  { %462 = vmatpush3.bf16.msra.mxu0 %v498_v22 }
  0x4b   :  { %463 = vmatprep.subr.bf16.mxu0 %v599_v18 }
  0x4c   :  { %258 = vmatpush1.bf16.msra.mxu1 %v490_v13 }
  0x4d   :  { %259 = vmatprep.subr.bf16.mxu1 %v598_v0 }
  0x4e   :  { %464 = vmatpush3.bf16.msra.mxu0 %v499_v23 }
  0x4f   :  { %465 = vmatprep.subr.bf16.mxu0 %v599_v18 }
  0x50   :  { %260 = vmatpush1.bf16.msra.mxu1 %v491_v14 }
  0x51   :  { %273 = vmatprep.subr.bf16.mxu1 %v598_v0 }
  0x52   :  { %466 = vmatpush3.bf16.msra.mxu0 %v500_v41 }
  0x53   :  { %467 = vmatprep.subr.bf16.mxu0 %v599_v18 }
  0x54   :  { %274 = vmatpush2.bf16.msra.mxu1 %v492_v15 }
  0x55   :  { %275 = vmatprep.subr.bf16.mxu1 %v598_v0 }
  0x56   :  { %468 = vmatpush3.bf16.msra.mxu0 %v501_v42 }
  0x58   :  { %276 = vmatpush2.bf16.msra.mxu1 %v493_v16 }
  0xf9   :  { %v143_v31 = vpop.f32.mrf.mxu0 }
  0xfa   :  { %v144_v32 = vadd.f32 %v143_v31, %v86_v29 }
  0xfb   :  { %v145_v33 = vpop.f32.mrf.mxu0 }
  0xfc   :  { %v146_v34 = vadd.f32 %v145_v33, %v90_v30  ;;  %v150_v35 = vmax.f32 %v144_v32, 0.0 }
  0xfd   :  { %v147_v36 = vpop.f32.mrf.mxu0 }
  0xfe   :  { %v151_v37 = vmax.f32 %v146_v34, 0.0  ;;  %v152_v40 = vpack.c.bf16 %v150_v35, %v150_v35 }
  0xff   :  { %v148_v38 = vpop.f32.mrf.mxu0 }
 0x100   :  { %v153_v39 = vpack.c.bf16 %v151_v37, %v151_v37 }
 0x102   :  { %434 = vmatprep.mubr.msk.bf16.mxu1 %vm241_vm2, %v153_v39 }
 0x103   :  { %278 = vmatmul.mubr.bf16.vlgmr.msra.gmra.mxu1 %v152_v40 }
 0x1c3   :  { %v279_v44 = vpop.f32.mrf.mxu1 }
 0x1c4   :  { %v280_v45 = vadd.f32 %v423_v43, %v279_v44 }
 0x1c5   :  { %v281_v46 = vpop.f32.mrf.mxu1 }
 0x1c6   :  { %v285_v47 = vmax.f32 %v280_v45, 0.0 }
 0x1c7   :  { %v282_v48 = vpop.f32.mrf.mxu1 }
 0x1c8   :  { %v286_v49 = vpack.c.bf16 %v285_v47, %v285_v47 }
 0x1c9   :  { %v283_v50 = vpop.f32.mrf.mxu1 }
 0x1ca   :  { %470 = vmatmul.mubr.bf16.vlgmr.msra.gmra.mxu0 %v286_v49 }
 0x28a   :  { %v392_v52 = vpop.f32.mrf.mxu0 }
 0x28b   :  { %v393_v53 = vadd.f32 %v435_v51, %v392_v52 }
 0x28c   :  { %v471_v54 = vpop.f32.mrf.mxu0 }
 0x28d   :  { %398 = vmax.xlane.f32.xlu0 %v393_v53 }
 0x28e   :  { %v395_v55 = vpop.f32.mrf.mxu0 }
 0x290   :  { %v472_v56 = vpop.f32.mrf.mxu0 }
 0x316   :  { %v399_v57 = vpop.xlane.xlu0 %398 }
 0x317   :  { %v400_v58 = vsub.f32 %v393_v53, %v399_v57 }
 0x319   :  { %v401_v59 = vmul.f32 1.442695, %v400_v58 }
 0x31b   :  { %502 = vpow2.f32 %v401_v59 }
 0x328   :  { %v503_v60 = vpop.eup %502 }
 0x329   :  { %403 = vadd.xlane.f32.xlu0 %v503_v60 }
 0x3b2   :  { %v404_v61 = vpop.xlane.xlu0 %403 }
 0x3b3   :  { %504 = vrcp.f32 %v404_v61 }
 0x3c0   :  { %v505_v62 = vpop.eup %504 }
 0x3c1   :  { %v406_v63 = vmul.f32 %v505_v62, %v404_v61 }
 0x3c3   :  { %v407_v0 = vsub.f32 2.0, %v406_v63 }
 0x3c5   :  { %v408_v1 = vmul.f32 %v505_v62, %v407_v0 }
 0x3c7   :  { %v409_v2 = vmul.f32 %v503_v60, %v408_v1 }
 0x3c9   :  { %411 = vst.msk [vmem:[%s672_s7] sm:$0xff] %vm410_vm4, %v409_v2 }
 0x3ca   :  { %416 = vsyncpa [#allocation3], 1 }
 0x3cb   :  { %417 = vsyncpa [#allocation5], 1 }
 0x3cc   :  { %418 = vsyncpa [#allocation8], 1 }

</bundles_post_ra>
